<compile_context>
chip_gen: v6e
topology: v6e:2x2x1
jax: 0.10.0
libtpu: 0.0.40
codegen_flags: <defaults>
</compile_context>

<pallas_src>
import functools

import jax
import jax.numpy as jnp
from jax.experimental import pallas as pl
from jax.experimental.pallas import tpu as pltpu


_MAX_BATCH_TILE = 1024   # bf16 img tile: 1024*2816*2B = 5.5 MiB (~11 MiB double-buffered)
_HEAD_OUT_PAD = 64       # each head's layer-3 output padded to 64 lanes -> 128-wide store


def _fused_double_critic_kernel(
    lm_ref, img_ref,
    w1l_ref, w1i_ref, b1_ref,
    w2a_ref, b2a_ref, w2b_ref, b2b_ref,
    w3a_ref, b3a_ref, w3b_ref, b3b_ref,
    out_ref,
):
    h_dim = w2a_ref.shape[0]

    # Layer 1: concat folded in + both heads fused along N (N = 2*in_dim).
    # Inputs arrive in bf16; bf16 x bf16 on the MXU with f32 accumulation.
    h = (jnp.dot(img_ref[...], w1i_ref[...], preferred_element_type=jnp.float32)
         + jnp.dot(lm_ref[...], w1l_ref[...], preferred_element_type=jnp.float32)
         + b1_ref[...])
    h = jnp.maximum(h, 0.0).astype(jnp.bfloat16)

    h_a = h[:, :h_dim]
    h_b = h[:, h_dim:]

    # Layer 2: per-head dots (no zero-padded block-diagonal weights).
    h1 = jnp.dot(h_a, w2a_ref[...], preferred_element_type=jnp.float32) + b2a_ref[...]
    h2 = jnp.dot(h_b, w2b_ref[...], preferred_element_type=jnp.float32) + b2b_ref[...]
    h1 = jnp.maximum(h1, 0.0).astype(jnp.bfloat16)
    h2 = jnp.maximum(h2, 0.0).astype(jnp.bfloat16)

    # Layer 3: per-head dots, output columns padded to 64 each -> one
    # lane-dense [tb, 128] store.
    o1 = jnp.dot(h1, w3a_ref[...], preferred_element_type=jnp.float32) + b3a_ref[...]
    o2 = jnp.dot(h2, w3b_ref[...], preferred_element_type=jnp.float32) + b3b_ref[...]
    out_ref[...] = jnp.concatenate([o1, o2], axis=1).astype(out_ref.dtype)


def fuse_critic_params(params1, params2):
    """Precompute the fused bf16 weights for both critic heads.

    Call ONCE per parameter update (hoisted out of the forward path so the
    forward does not rebuild / re-quantize weights on every call).
    """
    bf16, f32 = jnp.bfloat16, jnp.float32
    out_dim = params1["w3"].shape[1]
    pad = _HEAD_OUT_PAD - out_dim
    if pad < 0:
        raise ValueError("out_dim must be <= _HEAD_OUT_PAD")

    def pad_cols(x):
        return jnp.pad(x, ((0, 0), (0, pad)))

    return {
        # Layer 1: both heads fused along the output (N) dimension.
        "w1l": jnp.concatenate([params1["w1l"], params2["w1l"]], axis=1).astype(bf16),
        "w1i": jnp.concatenate([params1["w1i"], params2["w1i"]], axis=1).astype(bf16),
        "b1": jnp.concatenate([params1["b1"], params2["b1"]], axis=1).astype(f32),
        # Layers 2/3: kept per-head (no zero blocks).
        "w2a": params1["w2"].astype(bf16), "b2a": params1["b2"].astype(f32),
        "w2b": params2["w2"].astype(bf16), "b2b": params2["b2"].astype(f32),
        "w3a": pad_cols(params1["w3"]).astype(bf16),
        "b3a": pad_cols(params1["b3"]).astype(f32),
        "w3b": pad_cols(params2["w3"]).astype(bf16),
        "b3b": pad_cols(params2["b3"]).astype(f32),
    }


def _pick_batch_tile(batch):
    """Pick the batch tile: >= 2 grid steps whenever possible (so the
    "parallel" grid axis can feed both v7x TensorCores), capped at 1024 rows,
    rounded to a multiple of 8 sublanes."""
    if batch <= 8:
        return batch
    half = -(-batch // 2)            # cdiv(batch, 2)
    half = ((half + 7) // 8) * 8     # round up to a sublane multiple
    return min(_MAX_BATCH_TILE, half)


@functools.partial(jax.jit, static_argnames=("out_dim",))
def vlm_double_critic(lm_states, image_features, fused_params, out_dim=2):
    """Runs both critic heads in a single fused Pallas call.

    lm_states:      [B, in_dim]  (bf16 preferred; cast happens here if not)
    image_features: [B, img_dim] (bf16 preferred)
    fused_params:   output of fuse_critic_params (precomputed once per update)
    returns: (q1 [B, out_dim] f32, q2 [B, out_dim] f32)
    """
    batch, in_dim = lm_states.shape
    img_dim = image_features.shape[1]

    # Stream activations in bf16 (no-op if the caller already provides bf16).
    lm = lm_states.astype(jnp.bfloat16)
    img = image_features.astype(jnp.bfloat16)

    p = fused_params
    tb = _pick_batch_tile(batch)
    grid = (pl.cdiv(batch, tb),)

    row_map = lambda i: (i, 0)     # batch-tiled arrays
    const_map = lambda i: (0, 0)   # weights/biases: fetched once, VMEM-resident

    out = pl.pallas_call(
        _fused_double_critic_kernel,
        out_shape=jax.ShapeDtypeStruct((batch, 2 * _HEAD_OUT_PAD), jnp.float32),
        grid=grid,
        in_specs=[
            pl.BlockSpec((tb, in_dim), row_map),
            pl.BlockSpec((tb, img_dim), row_map),
            pl.BlockSpec(p["w1l"].shape, const_map),
            pl.BlockSpec(p["w1i"].shape, const_map),
            pl.BlockSpec(p["b1"].shape, const_map),
            pl.BlockSpec(p["w2a"].shape, const_map),
            pl.BlockSpec(p["b2a"].shape, const_map),
            pl.BlockSpec(p["w2b"].shape, const_map),
            pl.BlockSpec(p["b2b"].shape, const_map),
            pl.BlockSpec(p["w3a"].shape, const_map),
            pl.BlockSpec(p["b3a"].shape, const_map),
            pl.BlockSpec(p["w3b"].shape, const_map),
            pl.BlockSpec(p["b3b"].shape, const_map),
        ],
        out_specs=pl.BlockSpec((tb, 2 * _HEAD_OUT_PAD), row_map),
        compiler_params=pltpu.CompilerParams(
            dimension_semantics=("parallel",),
            # <= 32 MiB scoped VMEM: safe against v7x's 64 MiB physical VMEM as
            # well as v5e/v6e's 128 MiB.
            vmem_limit_bytes=32 * 1024 * 1024,
        ),
    )(lm, img,
      p["w1l"], p["w1i"], p["b1"],
      p["w2a"], p["b2a"], p["w2b"], p["b2b"],
      p["w3a"], p["b3a"], p["w3b"], p["b3b"])

    q1 = out[:, :out_dim]
    q2 = out[:, _HEAD_OUT_PAD:_HEAD_OUT_PAD + out_dim]
    return q1, q2


def _init_critic_params(key, in_dim, img_dim, out_dim):
    """Deterministic init, mimicking torch.nn.Linear default (uniform +-1/sqrt(fan_in))."""
    ks = jax.random.split(key, 6)
    d1 = in_dim + img_dim
    lim1 = 1.0 / jnp.sqrt(d1)
    lim2 = 1.0 / jnp.sqrt(in_dim)
    w1 = jax.random.uniform(ks[0], (d1, in_dim), jnp.float32, -lim1, lim1)
    return {
        "w1l": w1[:in_dim, :],
        "w1i": w1[in_dim:, :],
        "b1": jax.random.uniform(ks[1], (1, in_dim), jnp.float32, -lim1, lim1),
        "w2": jax.random.uniform(ks[2], (in_dim, in_dim), jnp.float32, -lim2, lim2),
        "b2": jax.random.uniform(ks[3], (1, in_dim), jnp.float32, -lim2, lim2),
        "w3": jax.random.uniform(ks[4], (in_dim, out_dim), jnp.float32, -lim2, lim2),
        "b3": jax.random.uniform(ks[5], (1, out_dim), jnp.float32, -lim2, lim2),
    }


def _reference(lm_bf16, img_bf16, p1, p2):
    """Pure-JAX reference mirroring the kernel's bf16 weight/activation rounding."""
    v = jnp.concatenate([lm_bf16, img_bf16], axis=1)

    def head(p):
        w1 = jnp.concatenate([p["w1l"], p["w1i"]], axis=0).astype(jnp.bfloat16)
        h = jnp.maximum(
            jnp.dot(v, w1, preferred_element_type=jnp.float32) + p["b1"], 0.0
        ).astype(jnp.bfloat16)
        h = jnp.maximum(
            jnp.dot(h, p["w2"].astype(jnp.bfloat16),
                    preferred_element_type=jnp.float32) + p["b2"], 0.0
        ).astype(jnp.bfloat16)
        return (jnp.dot(h, p["w3"].astype(jnp.bfloat16),
                        preferred_element_type=jnp.float32) + p["b3"])

    return head(p1), head(p2)


if __name__ == "__main__":
    B = 2
    in_dim = 32          # pooler_output dim (kept small)
    img_dim = 1408 * 2   # image_feature_dim from the module
    out_dim = 2          # hard-coded in the module

    root = jax.random.PRNGKey(0)
    k_lm, k_img, k_c1, k_c2 = jax.random.split(root, 4)

    # Upstream (LM pooler / vision encoder) should produce bf16; simulate that
    # by casting once OUTSIDE the kernel so the pallas_call streams bf16.
    lm_states = jax.random.normal(k_lm, (B, in_dim), jnp.float32).astype(jnp.bfloat16)
    image_features = jax.random.normal(k_img, (B, img_dim), jnp.float32).astype(jnp.bfloat16)

    params1 = _init_critic_params(k_c1, in_dim, img_dim, out_dim)
    params2 = _init_critic_params(k_c2, in_dim, img_dim, out_dim)

    # Fused bf16 weights: computed once per parameter update, NOT per forward.
    fused = fuse_critic_params(params1, params2)
    fused = jax.tree_util.tree_map(jax.block_until_ready, fused)

    q1, q2 = vlm_double_critic(lm_states, image_features, fused, out_dim=out_dim)
    jax.block_until_ready((q1, q2))

    r1, r2 = _reference(lm_states, image_features, params1, params2)
    assert q1.shape == (B, out_dim) and q2.shape == (B, out_dim)
    assert jnp.allclose(q1, r1, atol=2e-2, rtol=2e-2), (q1, r1)
    assert jnp.allclose(q2, r2, atol=2e-2, rtol=2e-2), (q2, r2)

    print("KERNEL_OK")
</pallas_src>

<mosaic_0001>
module attributes {stable_mosaic.version = 11 : i64} {
  func.func @_fused_double_critic_kernel(%arg0: i32, %arg1: memref<2x32xbf16, #tpu.memory_space<vmem>>, %arg2: memref<2x2816xbf16, #tpu.memory_space<vmem>>, %arg3: memref<32x64xbf16, #tpu.memory_space<vmem>>, %arg4: memref<2816x64xbf16, #tpu.memory_space<vmem>>, %arg5: memref<1x64xf32, #tpu.memory_space<vmem>>, %arg6: memref<32x32xbf16, #tpu.memory_space<vmem>>, %arg7: memref<1x32xf32, #tpu.memory_space<vmem>>, %arg8: memref<32x32xbf16, #tpu.memory_space<vmem>>, %arg9: memref<1x32xf32, #tpu.memory_space<vmem>>, %arg10: memref<32x64xbf16, #tpu.memory_space<vmem>>, %arg11: memref<1x64xf32, #tpu.memory_space<vmem>>, %arg12: memref<32x64xbf16, #tpu.memory_space<vmem>>, %arg13: memref<1x64xf32, #tpu.memory_space<vmem>>, %arg14: memref<2x128xf32, #tpu.memory_space<vmem>>) attributes {dimension_semantics = [#tpu.dimension_semantics<parallel>], iteration_bounds = array<i64: 1>, scalar_prefetch = 0 : i64, scratch_operands = 0 : i64, tpu.core_type = #tpu.core_type<tc>, window_params = [{transform_indices = @transform_0, window_bounds = array<i64: 2, 32>}, {transform_indices = @transform_1, window_bounds = array<i64: 2, 2816>}, {pipeline_mode = #tpu.pipeline_mode<synchronous>, transform_indices = @transform_2, window_bounds = array<i64: 32, 64>}, {pipeline_mode = #tpu.pipeline_mode<synchronous>, transform_indices = @transform_3, window_bounds = array<i64: 2816, 64>}, {pipeline_mode = #tpu.pipeline_mode<synchronous>, transform_indices = @transform_4, window_bounds = array<i64: 1, 64>}, {pipeline_mode = #tpu.pipeline_mode<synchronous>, transform_indices = @transform_5, window_bounds = array<i64: 32, 32>}, {pipeline_mode = #tpu.pipeline_mode<synchronous>, transform_indices = @transform_6, window_bounds = array<i64: 1, 32>}, {pipeline_mode = #tpu.pipeline_mode<synchronous>, transform_indices = @transform_7, window_bounds = array<i64: 32, 32>}, {pipeline_mode = #tpu.pipeline_mode<synchronous>, transform_indices = @transform_8, window_bounds = array<i64: 1, 32>}, {pipeline_mode = #tpu.pipeline_mode<synchronous>, transform_indices = @transform_9, window_bounds = array<i64: 32, 64>}, {pipeline_mode = #tpu.pipeline_mode<synchronous>, transform_indices = @transform_10, window_bounds = array<i64: 1, 64>}, {pipeline_mode = #tpu.pipeline_mode<synchronous>, transform_indices = @transform_11, window_bounds = array<i64: 32, 64>}, {pipeline_mode = #tpu.pipeline_mode<synchronous>, transform_indices = @transform_12, window_bounds = array<i64: 1, 64>}, {transform_indices = @transform_13, window_bounds = array<i64: 2, 128>}]} {
    %c0 = arith.constant 0 : index
    %c0_0 = arith.constant 0 : index
    %0 = vector.load %arg2[%c0, %c0_0] : memref<2x2816xbf16, #tpu.memory_space<vmem>>, vector<2x2816xbf16>
    %c0_1 = arith.constant 0 : index
    %c0_2 = arith.constant 0 : index
    %1 = vector.load %arg4[%c0_1, %c0_2] : memref<2816x64xbf16, #tpu.memory_space<vmem>>, vector<2816x64xbf16>
    %cst = arith.constant dense<0.000000e+00> : vector<2x64xf32>
    %2 = tpu.matmul %0, %1, %cst {dimension_numbers = #tpu.dot_dimension_numbers<[1], [0], [0], [1], [0, 0, 1, 1], [], []>} : vector<2x2816xbf16>, vector<2816x64xbf16>, vector<2x64xf32> -> vector<2x64xf32>
    %c0_3 = arith.constant 0 : index
    %c0_4 = arith.constant 0 : index
    %3 = vector.load %arg1[%c0_3, %c0_4] : memref<2x32xbf16, #tpu.memory_space<vmem>>, vector<2x32xbf16>
    %c0_5 = arith.constant 0 : index
    %c0_6 = arith.constant 0 : index
    %4 = vector.load %arg3[%c0_5, %c0_6] : memref<32x64xbf16, #tpu.memory_space<vmem>>, vector<32x64xbf16>
    %cst_7 = arith.constant dense<0.000000e+00> : vector<2x64xf32>
    %5 = tpu.matmul %3, %4, %cst_7 {dimension_numbers = #tpu.dot_dimension_numbers<[1], [0], [0], [1], [0, 0, 1, 1], [], []>} : vector<2x32xbf16>, vector<32x64xbf16>, vector<2x64xf32> -> vector<2x64xf32>
    %6 = arith.addf %2, %5 : vector<2x64xf32>
    %c0_8 = arith.constant 0 : index
    %c0_9 = arith.constant 0 : index
    %7 = vector.load %arg5[%c0_8, %c0_9] : memref<1x64xf32, #tpu.memory_space<vmem>>, vector<1x64xf32>
    %8 = vector.broadcast %7 : vector<1x64xf32> to vector<2x64xf32>
    %9 = arith.addf %6, %8 : vector<2x64xf32>
    %cst_10 = arith.constant 0.000000e+00 : f32
    %10 = vector.broadcast %cst_10 : f32 to vector<2x64xf32>
    %11 = arith.maximumf %9, %10 : vector<2x64xf32>
    %12 = arith.truncf %11 : vector<2x64xf32> to vector<2x64xbf16>
    %13 = vector.extract_strided_slice %12 {offsets = [0, 0], sizes = [2, 32], strides = [1, 1]} : vector<2x64xbf16> to vector<2x32xbf16>
    %14 = vector.extract_strided_slice %12 {offsets = [0, 32], sizes = [2, 32], strides = [1, 1]} : vector<2x64xbf16> to vector<2x32xbf16>
    %c0_11 = arith.constant 0 : index
    %c0_12 = arith.constant 0 : index
    %15 = vector.load %arg6[%c0_11, %c0_12] : memref<32x32xbf16, #tpu.memory_space<vmem>>, vector<32x32xbf16>
    %cst_13 = arith.constant dense<0.000000e+00> : vector<2x32xf32>
    %16 = tpu.matmul %13, %15, %cst_13 {dimension_numbers = #tpu.dot_dimension_numbers<[1], [0], [0], [1], [0, 0, 1, 1], [], []>} : vector<2x32xbf16>, vector<32x32xbf16>, vector<2x32xf32> -> vector<2x32xf32>
    %c0_14 = arith.constant 0 : index
    %c0_15 = arith.constant 0 : index
    %17 = vector.load %arg7[%c0_14, %c0_15] : memref<1x32xf32, #tpu.memory_space<vmem>>, vector<1x32xf32>
    %18 = vector.broadcast %17 : vector<1x32xf32> to vector<2x32xf32>
    %19 = arith.addf %16, %18 : vector<2x32xf32>
    %c0_16 = arith.constant 0 : index
    %c0_17 = arith.constant 0 : index
    %20 = vector.load %arg8[%c0_16, %c0_17] : memref<32x32xbf16, #tpu.memory_space<vmem>>, vector<32x32xbf16>
    %cst_18 = arith.constant dense<0.000000e+00> : vector<2x32xf32>
    %21 = tpu.matmul %14, %20, %cst_18 {dimension_numbers = #tpu.dot_dimension_numbers<[1], [0], [0], [1], [0, 0, 1, 1], [], []>} : vector<2x32xbf16>, vector<32x32xbf16>, vector<2x32xf32> -> vector<2x32xf32>
    %c0_19 = arith.constant 0 : index
    %c0_20 = arith.constant 0 : index
    %22 = vector.load %arg9[%c0_19, %c0_20] : memref<1x32xf32, #tpu.memory_space<vmem>>, vector<1x32xf32>
    %23 = vector.broadcast %22 : vector<1x32xf32> to vector<2x32xf32>
    %24 = arith.addf %21, %23 : vector<2x32xf32>
    %cst_21 = arith.constant 0.000000e+00 : f32
    %25 = vector.broadcast %cst_21 : f32 to vector<2x32xf32>
    %26 = arith.maximumf %19, %25 : vector<2x32xf32>
    %27 = arith.truncf %26 : vector<2x32xf32> to vector<2x32xbf16>
    %cst_22 = arith.constant 0.000000e+00 : f32
    %28 = vector.broadcast %cst_22 : f32 to vector<2x32xf32>
    %29 = arith.maximumf %24, %28 : vector<2x32xf32>
    %30 = arith.truncf %29 : vector<2x32xf32> to vector<2x32xbf16>
    %c0_23 = arith.constant 0 : index
    %c0_24 = arith.constant 0 : index
    %31 = vector.load %arg10[%c0_23, %c0_24] : memref<32x64xbf16, #tpu.memory_space<vmem>>, vector<32x64xbf16>
    %cst_25 = arith.constant dense<0.000000e+00> : vector<2x64xf32>
    %32 = tpu.matmul %27, %31, %cst_25 {dimension_numbers = #tpu.dot_dimension_numbers<[1], [0], [0], [1], [0, 0, 1, 1], [], []>} : vector<2x32xbf16>, vector<32x64xbf16>, vector<2x64xf32> -> vector<2x64xf32>
    %c0_26 = arith.constant 0 : index
    %c0_27 = arith.constant 0 : index
    %33 = vector.load %arg11[%c0_26, %c0_27] : memref<1x64xf32, #tpu.memory_space<vmem>>, vector<1x64xf32>
    %34 = vector.broadcast %33 : vector<1x64xf32> to vector<2x64xf32>
    %35 = arith.addf %32, %34 : vector<2x64xf32>
    %c0_28 = arith.constant 0 : index
    %c0_29 = arith.constant 0 : index
    %36 = vector.load %arg12[%c0_28, %c0_29] : memref<32x64xbf16, #tpu.memory_space<vmem>>, vector<32x64xbf16>
    %cst_30 = arith.constant dense<0.000000e+00> : vector<2x64xf32>
    %37 = tpu.matmul %30, %36, %cst_30 {dimension_numbers = #tpu.dot_dimension_numbers<[1], [0], [0], [1], [0, 0, 1, 1], [], []>} : vector<2x32xbf16>, vector<32x64xbf16>, vector<2x64xf32> -> vector<2x64xf32>
    %c0_31 = arith.constant 0 : index
    %c0_32 = arith.constant 0 : index
    %38 = vector.load %arg13[%c0_31, %c0_32] : memref<1x64xf32, #tpu.memory_space<vmem>>, vector<1x64xf32>
    %39 = vector.broadcast %38 : vector<1x64xf32> to vector<2x64xf32>
    %40 = arith.addf %37, %39 : vector<2x64xf32>
    %41 = tpu.concatenate %35, %40 in 1 : vector<2x64xf32>, vector<2x64xf32> -> vector<2x128xf32>
    %c0_33 = arith.constant 0 : index
    %c0_34 = arith.constant 0 : index
    %42 = vector.load %arg14[%c0_33, %c0_34] : memref<2x128xf32, #tpu.memory_space<vmem>>, vector<2x128xf32>
    tpu.vector_store %arg14[%c0_33, %c0_34], %41 {strides = array<i32>} : memref<2x128xf32, #tpu.memory_space<vmem>>, vector<2x128xf32>,
    return
  }
  func.func @transform_0(%arg0: i32) -> (i32, i32) {
    %c0_i32 = arith.constant 0 : i32
    %c0_i32_0 = arith.constant 0 : i32
    return %arg0, %c0_i32 : i32, i32
  }
  func.func @transform_1(%arg0: i32) -> (i32, i32) {
    %c0_i32 = arith.constant 0 : i32
    %c0_i32_0 = arith.constant 0 : i32
    return %arg0, %c0_i32 : i32, i32
  }
  func.func @transform_2(%arg0: i32) -> (i32, i32) {
    %c0_i32 = arith.constant 0 : i32
    %c0_i32_0 = arith.constant 0 : i32
    %c0_i32_1 = arith.constant 0 : i32
    return %c0_i32, %c0_i32_0 : i32, i32
  }
  func.func @transform_3(%arg0: i32) -> (i32, i32) {
    %c0_i32 = arith.constant 0 : i32
    %c0_i32_0 = arith.constant 0 : i32
    %c0_i32_1 = arith.constant 0 : i32
    return %c0_i32, %c0_i32_0 : i32, i32
  }
  func.func @transform_4(%arg0: i32) -> (i32, i32) {
    %c0_i32 = arith.constant 0 : i32
    %c0_i32_0 = arith.constant 0 : i32
    %c0_i32_1 = arith.constant 0 : i32
    return %c0_i32, %c0_i32_0 : i32, i32
  }
  func.func @transform_5(%arg0: i32) -> (i32, i32) {
    %c0_i32 = arith.constant 0 : i32
    %c0_i32_0 = arith.constant 0 : i32
    %c0_i32_1 = arith.constant 0 : i32
    return %c0_i32, %c0_i32_0 : i32, i32
  }
  func.func @transform_6(%arg0: i32) -> (i32, i32) {
    %c0_i32 = arith.constant 0 : i32
    %c0_i32_0 = arith.constant 0 : i32
    %c0_i32_1 = arith.constant 0 : i32
    return %c0_i32, %c0_i32_0 : i32, i32
  }
  func.func @transform_7(%arg0: i32) -> (i32, i32) {
    %c0_i32 = arith.constant 0 : i32
    %c0_i32_0 = arith.constant 0 : i32
    %c0_i32_1 = arith.constant 0 : i32
    return %c0_i32, %c0_i32_0 : i32, i32
  }
  func.func @transform_8(%arg0: i32) -> (i32, i32) {
    %c0_i32 = arith.constant 0 : i32
    %c0_i32_0 = arith.constant 0 : i32
    %c0_i32_1 = arith.constant 0 : i32
    return %c0_i32, %c0_i32_0 : i32, i32
  }
  func.func @transform_9(%arg0: i32) -> (i32, i32) {
    %c0_i32 = arith.constant 0 : i32
    %c0_i32_0 = arith.constant 0 : i32
    %c0_i32_1 = arith.constant 0 : i32
    return %c0_i32, %c0_i32_0 : i32, i32
  }
  func.func @transform_10(%arg0: i32) -> (i32, i32) {
    %c0_i32 = arith.constant 0 : i32
    %c0_i32_0 = arith.constant 0 : i32
    %c0_i32_1 = arith.constant 0 : i32
    return %c0_i32, %c0_i32_0 : i32, i32
  }
  func.func @transform_11(%arg0: i32) -> (i32, i32) {
    %c0_i32 = arith.constant 0 : i32
    %c0_i32_0 = arith.constant 0 : i32
    %c0_i32_1 = arith.constant 0 : i32
    return %c0_i32, %c0_i32_0 : i32, i32
  }
  func.func @transform_12(%arg0: i32) -> (i32, i32) {
    %c0_i32 = arith.constant 0 : i32
    %c0_i32_0 = arith.constant 0 : i32
    %c0_i32_1 = arith.constant 0 : i32
    return %c0_i32, %c0_i32_0 : i32, i32
  }
  func.func @transform_13(%arg0: i32) -> (i32, i32) {
    %c0_i32 = arith.constant 0 : i32
    %c0_i32_0 = arith.constant 0 : i32
    return %arg0, %c0_i32 : i32, i32
  }
}

</mosaic_0001>

<bundles_post_ra>
// kernel: vlm_double_critic.1
= control target key start
LH: loop header
LB: loop body
LE: loop exit
PB: predicated region body
PF: predicated region fallthrough
CT: control target
= control target key end

     0   :  { %v3106_v0 = vmov 0.0   ;;  %vm3107_vm0 = vmmov 0   ;;  %vm417_vm1 = vcmask 261120   ;;  %v3108_v21 = vmov 1966171168   ;;  %s3824_s2 = inlined_call_operand.vmem [shape: bf16[32,64], index: 2, kind: input, shape index: {}]   ;;  %s3825_s3 = inlined_call_operand.vmem [shape: bf16[2816,64], index: 3, kind: input, shape index: {}]   ;;  %s3826_s0 = inlined_call_operand.vmem [shape: bf16[2,32], index: 0, kind: input, shape index: {}]   ;;  %s3827_s1 = inlined_call_operand.vmem [shape: bf16[2,2816], index: 1, kind: input, shape index: {}]   ;;  %s3828_s5 = inlined_call_operand.vmem [shape: bf16[32,32], index: 5, kind: input, shape index: {}]   ;;  %s3829_s7 = inlined_call_operand.vmem [shape: bf16[32,32], index: 7, kind: input, shape index: {}]   ;;  %s3830_s4 = inlined_call_operand.vmem [shape: f32[1,64], index: 4, kind: input, shape index: {}]   ;;  %s3831_s9 = inlined_call_operand.vmem [shape: bf16[32,64], index: 9, kind: input, shape index: {}]   ;;  %s3832_s11 = inlined_call_operand.vmem [shape: bf16[32,64], index: 11, kind: input, shape index: {}]   ;;  %s3833_s6 = inlined_call_operand.vmem [shape: f32[1,32], index: 6, kind: input, shape index: {}]   ;;  %s3834_s8 = inlined_call_operand.vmem [shape: f32[1,32], index: 8, kind: input, shape index: {}]   ;;  %s3835_s12 = inlined_call_operand.vmem [shape: f32[1,64], index: 12, kind: input, shape index: {}]   ;;  %s3836_s10 = inlined_call_operand.vmem [shape: f32[1,64], index: 10, kind: input, shape index: {}]   ;;  %s3837_s13 = inlined_call_operand.vmem [shape: f32[2,128], index: 13, kind: output, shape index: {}]  }
   0x1   :  { %2872 = vmatprep.subr.bf16.mxu0 %v3106_v0  ;;  %v2917_v1 = vld [vmem:[%s3824_s2 + $0x8] sm:$0xff]   ;;  %2876 = vmatprep.mubr.msk.bf16.mxu0 %vm3107_vm0, %v3106_v0  ;;  %v2918_v2 = vld [vmem:[%s3825_s3 + $0x78] sm:$0xff]   ;;  %v2920_v4 = vld [vmem:[%s3824_s2] sm:$0xff]   ;;  %v466_v22 = vunpack.c.l.s4 %v3108_v21  ;;  %v468_v23 = vlaneseq  ;;  %vm2412_vm2 = vcmask 523264  }
   0x2   :  { %2873 = vmatpush3.bf16.msra.mxu0 %v2917_v1  ;;  %v2919_v3 = vld [vmem:[%s3825_s3 + $0x38] sm:$0xff]   ;;  %2618 = vmatprep.subr.bf16.mxu1 %v2918_v2  ;;  %v2921_v5 = vld [vmem:[%s3825_s3 + $0x70] sm:$0xff]   ;;  %v400_v8 = vld [vmem:[%s3826_s0] sm:$0x1] }
   0x3   :  { %2874 = vmatprep.subr.bf16.mxu0 %v3106_v0  ;;  %2619 = vmatpush3.bf16.msra.mxu1 %v2919_v3  ;;  %v2922_v6 = vld [vmem:[%s3825_s3 + $0x30] sm:$0xff]   ;;  %v2923_v7 = vld [vmem:[%s3825_s3 + $0xf8] sm:$0xff]   ;;  %v2924_v9 = vld [vmem:[%s3825_s3 + $0x68] sm:$0xff]   ;;  %v467_v28 = vunpack.c.0.s8 %v466_v22  ;;  %v469_v29 = vshrl.u32 %v468_v23, 7 }
   0x4   :  { %2620 = vmatprep.subr.bf16.mxu1 %v2921_v5  ;;  %v2925_v10 = vld [vmem:[%s3825_s3 + $0xb8] sm:$0xff]   ;;  %v2926_v11 = vld [vmem:[%s3825_s3 + $0x28] sm:$0xff]   ;;  %v2927_v12 = vld [vmem:[%s3825_s3 + $0xf0] sm:$0xff]  }
   0x5   :  { %v2928_v13 = vld [vmem:[%s3825_s3 + $0x60] sm:$0xff]   ;;  %v2929_v14 = vld [vmem:[%s3825_s3 + $0xb0] sm:$0xff]   ;;  %v2931_v16 = vld [vmem:[%s3825_s3 + $0xe8] sm:$0xff]   ;;  %v3270_v34 = vsub.s32 %v467_v28, %v469_v29 }
   0x6   :  { %2875 = vmatpush3.bf16.msra.mxu0 %v2920_v4  ;;  %v2930_v15 = vld [vmem:[%s3825_s3 + $0x20] sm:$0xff]   ;;  %v2932_v17 = vld [vmem:[%s3825_s3 + $0x58] sm:$0xff]   ;;  %v2933_v18 = vld [vmem:[%s3825_s3 + $0xa8] sm:$0xff]  }
   0x7   :  { %2621 = vmatpush3.bf16.msra.mxu1 %v2922_v6  ;;  %2640 = vmatprep.subr.bf16.mxu0 %v2923_v7  ;;  %v2934_v19 = vld [vmem:[%s3825_s3 + $0x18] sm:$0xff]   ;;  %v2935_v20 = vld [vmem:[%s3825_s3 + $0xe0] sm:$0xff]   ;;  %v2936_v24 = vld [vmem:[%s3825_s3 + $0x50] sm:$0xff]  }
   0x8   :  { %2622 = vmatprep.subr.bf16.mxu1 %v2924_v9  ;;  %v2937_v25 = vld [vmem:[%s3825_s3 + $0xa0] sm:$0xff]   ;;  %v2938_v26 = vld [vmem:[%s3825_s3 + $0x10] sm:$0xff]   ;;  %v2939_v27 = vld [vmem:[%s3825_s3 + $0xd8] sm:$0xff]  }
   0x9   :  { %2877 = vmatmul.mubr.msk.bf16.vlgmr.msra.gmra.mxu0 %vm417_vm1, %v400_v8  ;;  %v2940_v30 = vld [vmem:[%s3825_s3 + $0x48] sm:$0xff]   ;;  %v2941_v31 = vld [vmem:[%s3825_s3 + $0x98] sm:$0xff]   ;;  %v2943_v33 = vld [vmem:[%s3825_s3 + $0xd0] sm:$0xff]  }
   0xa   :  { %2641 = vmatpush3.bf16.msra.mxu0 %v2925_v10  ;;  %v2942_v32 = vld [vmem:[%s3825_s3 + $0x8] sm:$0xff]   ;;  %v2944_v35 = vld [vmem:[%s3825_s3 + $0x40] sm:$0xff]   ;;  %v2945_v36 = vld [vmem:[%s3825_s3 + $0x90] sm:$0xff]  }
   0xb   :  { %2623 = vmatpush3.bf16.msra.mxu1 %v2926_v11  ;;  %2642 = vmatprep.subr.bf16.mxu0 %v2927_v12  ;;  %v2946_v37 = vld [vmem:[%s3825_s3] sm:$0xff]   ;;  %v2948_v41 = vld [vmem:[%s3825_s3 + $0xc8] sm:$0xff]   ;;  %v2950_v44 = vld [vmem:[%s3825_s3 + $0x178] sm:$0xff]  }
   0xc   :  { %2624 = vmatprep.subr.bf16.mxu1 %v2928_v13  ;;  %v45_v38 = vld [vmem:[%s3827_s1] sm:$0xff]  ;;  %v2949_v42 = vld [vmem:[%s3825_s3 + $0x88] sm:$0xff]   ;;  %v2951_v47 = vld [vmem:[%s3825_s3 + $0x138] sm:$0xff]  }
   0xd   :  { %v464_v39 = vcombine.high %v45_v38, %v45_v38  ;;  %v471_v40 = vrot.slane %v45_v38, %v3270_v34  ;;  %v2952_v49 = vld [vmem:[%s3825_s3 + $0xc0] sm:$0xff]   ;;  %v2954_v53 = vld [vmem:[%s3825_s3 + $0x170] sm:$0xff]   ;;  %v2956_v57 = vld [vmem:[%s3825_s3 + $0x1f8] sm:$0xff]  }
   0xe   :  { %2643 = vmatpush3.bf16.msra.mxu0 %v2929_v14  ;;  %v2953_v51 = vld [vmem:[%s3825_s3 + $0x80] sm:$0xff]   ;;  %v2955_v56 = vld [vmem:[%s3825_s3 + $0x130] sm:$0xff]   ;;  %v2957_v58 = vld [vmem:[%s3825_s3 + $0x168] sm:$0xff]  }
   0xf   :  { %2625 = vmatpush3.bf16.msra.mxu1 %v2930_v15  ;;  %2644 = vmatprep.subr.bf16.mxu0 %v2931_v16  ;;  %v479_v43 = vcombine.high %v471_v40, %v471_v40  ;;  %v3295_v45 = vrot.slane %v464_v39, %v3270_v34  ;;  %v487_v46 = vrot.slane %v471_v40, %v3270_v34  ;;  %v2958_v60 = vld [vmem:[%s3825_s3 + $0x1b8] sm:$0xff]   ;;  %v2959_v61 = vld [vmem:[%s3825_s3 + $0x128] sm:$0xff]   ;;  %v2960_v62 = vld [vmem:[%s3825_s3 + $0x1f0] sm:$0xff]  }
  0x10   :  { %2626 = vmatprep.subr.bf16.mxu1 %v2932_v17  ;;  %v2961_v63 = vld [vmem:[%s3825_s3 + $0x160] sm:$0xff]   ;;  %v2962_v1 = vld [vmem:[%s3825_s3 + $0x1b0] sm:$0xff]   ;;  %v2964_v3 = vld [vmem:[%s3825_s3 + $0x1e8] sm:$0xff]  }
  0x11   :  { %v501_v48 = vrot.slane %v479_v43, %v3270_v34  ;;  %v480_v50 = vcombine.high %v3295_v45, %v3295_v45  ;;  %v509_v55 = vcombine.high %v487_v46, %v487_v46  ;;  %v2963_v2 = vld [vmem:[%s3825_s3 + $0x120] sm:$0xff]   ;;  %v2965_v4 = vld [vmem:[%s3825_s3 + $0x158] sm:$0xff]   ;;  %v2966_v5 = vld [vmem:[%s3825_s3 + $0x1a8] sm:$0xff]   ;;  %v494_v22 = vrot.slane %v3295_v45, %v3270_v34 }
  0x12   :  { %2645 = vmatpush3.bf16.msra.mxu0 %v2933_v18  ;;  %v2967_v6 = vld [vmem:[%s3825_s3 + $0x118] sm:$0xff]   ;;  %v2968_v7 = vld [vmem:[%s3825_s3 + $0x1e0] sm:$0xff]   ;;  %v2969_v8 = vld [vmem:[%s3825_s3 + $0x150] sm:$0xff]  }
  0x13   :  { %2627 = vmatpush3.bf16.msra.mxu1 %v2934_v19  ;;  %2646 = vmatprep.subr.bf16.mxu0 %v2935_v20  ;;  %v511_v52 = vcombine.high %v501_v48, %v501_v48  ;;  %v508_v54 = vrot.slane %v480_v50, %v3270_v34  ;;  %v2970_v9 = vld [vmem:[%s3825_s3 + $0x1a0] sm:$0xff]   ;;  %v2971_v10 = vld [vmem:[%s3825_s3 + $0x110] sm:$0xff]   ;;  %v2972_v11 = vld [vmem:[%s3825_s3 + $0x1d8] sm:$0xff]   ;;  %v510_v28 = vcombine.high %v494_v22, %v494_v22 }
  0x14   :  { %2628 = vmatprep.subr.bf16.mxu1 %v2936_v24  ;;  %1719 = vmatprep.mubr.bf16.mxu1 %v501_v48  ;;  %v2973_v12 = vld [vmem:[%s3825_s3 + $0x148] sm:$0xff]   ;;  %v2974_v13 = vld [vmem:[%s3825_s3 + $0x198] sm:$0xff]   ;;  %v2976_v15 = vld [vmem:[%s3825_s3 + $0x1d0] sm:$0xff]  }
  0x15   :  { %1759 = vmatprep.mubr.bf16.mxu0 %v511_v52  ;;  %v512_v59 = vcombine.high %v508_v54, %v508_v54  ;;  %v2975_v14 = vld [vmem:[%s3825_s3 + $0x108] sm:$0xff]   ;;  %v2977_v16 = vld [vmem:[%s3825_s3 + $0x140] sm:$0xff]   ;;  %v2978_v17 = vld [vmem:[%s3825_s3 + $0x190] sm:$0xff]  }
  0x16   :  { %2647 = vmatpush3.bf16.msra.mxu0 %v2937_v25  ;;  %v2979_v18 = vld [vmem:[%s3825_s3 + $0x100] sm:$0xff]   ;;  %v2980_v19 = vld [vmem:[%s3825_s3 + $0x1c8] sm:$0xff]   ;;  %v2982_v21 = vld [vmem:[%s3825_s3 + $0x278] sm:$0xff]  }
  0x17   :  { %2629 = vmatpush3.bf16.msra.mxu1 %v2938_v26  ;;  %2648 = vmatprep.subr.bf16.mxu0 %v2939_v27  ;;  %v2981_v20 = vld [vmem:[%s3825_s3 + $0x188] sm:$0xff]   ;;  %v2983_v23 = vld [vmem:[%s3825_s3 + $0x238] sm:$0xff]   ;;  %v2984_v24 = vld [vmem:[%s3825_s3 + $0x1c0] sm:$0xff]  }
  0x18   :  { %2630 = vmatprep.subr.bf16.mxu1 %v2940_v30  ;;  %v2985_v25 = vld [vmem:[%s3825_s3 + $0x180] sm:$0xff]   ;;  %v2986_v26 = vld [vmem:[%s3825_s3 + $0x270] sm:$0xff]   ;;  %v2988_v29 = vld [vmem:[%s3825_s3 + $0x2f8] sm:$0xff]  }
  0x19   :  { %v2987_v27 = vld [vmem:[%s3825_s3 + $0x230] sm:$0xff]   ;;  %v2989_v30 = vld [vmem:[%s3825_s3 + $0x268] sm:$0xff]   ;;  %v2997_v39 = vld [vmem:[%s3825_s3 + $0x258] sm:$0xff]  }
  0x1a   :  { %2649 = vmatpush3.bf16.msra.mxu0 %v2941_v31  ;;  %v2990_v31 = vld [vmem:[%s3825_s3 + $0x2b8] sm:$0xff]   ;;  %v2996_v38 = vld [vmem:[%s3825_s3 + $0x2e8] sm:$0xff]   ;;  %v3001_v43 = vld [vmem:[%s3825_s3 + $0x250] sm:$0xff]  }
  0x1b   :  { %2631 = vmatpush3.bf16.msra.mxu1 %v2942_v32  ;;  %2650 = vmatprep.subr.bf16.mxu0 %v2943_v33  ;;  %v2991_v32 = vld [vmem:[%s3825_s3 + $0x228] sm:$0xff]   ;;  %v2992_v33 = vld [vmem:[%s3825_s3 + $0x2f0] sm:$0xff]   ;;  %v3006_v48 = vld [vmem:[%s3825_s3 + $0x298] sm:$0xff]  }
  0x1c   :  { %2632 = vmatprep.subr.bf16.mxu1 %v2944_v35  ;;  %v2993_v35 = vld [vmem:[%s3825_s3 + $0x260] sm:$0xff]   ;;  %v2998_v40 = vld [vmem:[%s3825_s3 + $0x2a8] sm:$0xff]   ;;  %v3003_v45 = vld [vmem:[%s3825_s3 + $0x210] sm:$0xff]  }
  0x1d   :  { %v3008_v50 = vld [vmem:[%s3825_s3 + $0x2d0] sm:$0xff]  }
  0x1e   :  { %2651 = vmatpush3.bf16.msra.mxu0 %v2945_v36  ;;  %v2994_v36 = vld [vmem:[%s3825_s3 + $0x2b0] sm:$0xff]  }
  0x1f   :  { %2633 = vmatpush3.bf16.msra.mxu1 %v2946_v37  ;;  %2652 = vmatprep.subr.bf16.mxu0 %v2948_v41  ;;  %v2995_v37 = vld [vmem:[%s3825_s3 + $0x220] sm:$0xff]   ;;  %v2999_v41 = vld [vmem:[%s3825_s3 + $0x218] sm:$0xff]   ;;  %v3010_v52 = vld [vmem:[%s3825_s3 + $0x290] sm:$0xff]  }
  0x20   :  { %2662 = vmatprep.subr.bf16.mxu1 %v2950_v44  ;;  %v3002_v44 = vld [vmem:[%s3825_s3 + $0x2a0] sm:$0xff]  }
  0x22   :  { %2653 = vmatpush3.bf16.msra.mxu0 %v2949_v42  ;;  %1720 = vmatmul.mubr.bf16.vlgmr.msra.gmra.mxu1 %v487_v46  ;;  %v3000_v42 = vld [vmem:[%s3825_s3 + $0x2e0] sm:$0xff]   ;;  %v3004_v46 = vld [vmem:[%s3825_s3 + $0x2d8] sm:$0xff]  }
  0x23   :  { %2654 = vmatprep.subr.bf16.mxu0 %v2952_v49  ;;  %2663 = vmatpush3.bf16.msra.mxu1 %v2951_v47  ;;  %v3005_v47 = vld [vmem:[%s3825_s3 + $0x248] sm:$0xff]  }
  0x24   :  { %2664 = vmatprep.subr.bf16.mxu1 %v2954_v53  ;;  %1799 = vmatprep.mubr.bf16.mxu1 %v508_v54  ;;  %v3007_v49 = vld [vmem:[%s3825_s3 + $0x208] sm:$0xff]   ;;  %v3011_v53 = vld [vmem:[%s3825_s3 + $0x200] sm:$0xff]  }
  0x25   :  { %v46_v54 = vld [vmem:[%s3827_s1 + $0x8] sm:$0xff] }
  0x26   :  { %2655 = vmatpush3.bf16.msra.mxu0 %v2953_v51  ;;  %v3009_v51 = vld [vmem:[%s3825_s3 + $0x240] sm:$0xff]  }
  0x27   :  { %2684 = vmatprep.subr.bf16.mxu0 %v2956_v57  ;;  %2665 = vmatpush3.bf16.msra.mxu1 %v2955_v56  ;;  %v3012_v56 = vld [vmem:[%s3825_s3 + $0x2c8] sm:$0xff]   ;;  %v513_v57 = vcombine.high %v46_v54, %v46_v54 }
  0x28   :  { %2666 = vmatprep.subr.bf16.mxu1 %v2957_v58  ;;  %v3013_v58 = vld [vmem:[%s3825_s3 + $0x288] sm:$0xff]  }
  0x29   :  { %1760 = vmatmul.mubr.bf16.vlgmr.msra.gmra.mxu0 %v509_v55  ;;  %v520_v55 = vrot.slane %v46_v54, %v3270_v34  ;;  %v3061_v54 = vld [vmem:[%s3825_s3 + $0x4e8] sm:$0xff]  }
  0x2a   :  { %2685 = vmatpush3.bf16.msra.mxu0 %v2958_v60  ;;  %1839 = vmatprep.mubr.bf16.mxu0 %v512_v59  ;;  %v3014_v60 = vld [vmem:[%s3825_s3 + $0x378] sm:$0xff]  }
  0x2b   :  { %2686 = vmatprep.subr.bf16.mxu0 %v2960_v62  ;;  %2667 = vmatpush3.bf16.msra.mxu1 %v2959_v61  ;;  %v528_v59 = vcombine.high %v520_v55, %v520_v55  ;;  %v3501_v61 = vrot.slane %v513_v57, %v3270_v34  ;;  %v536_v62 = vrot.slane %v520_v55, %v3270_v34  ;;  %v3062_v55 = vld [vmem:[%s3825_s3 + $0x458] sm:$0xff]  }
  0x2c   :  { %2668 = vmatprep.subr.bf16.mxu1 %v2961_v63  ;;  %v3015_v63 = vld [vmem:[%s3825_s3 + $0x338] sm:$0xff]  }
  0x2d   :  { %v3064_v57 = vld [vmem:[%s3825_s3 + $0x418] sm:$0xff]  }
  0x2e   :  { %2687 = vmatpush3.bf16.msra.mxu0 %v2962_v1  ;;  %v550_v1 = vrot.slane %v528_v59, %v3270_v34  ;;  %v3066_v59 = vld [vmem:[%s3825_s3 + $0x450] sm:$0xff]  }
  0x2f   :  { %2688 = vmatprep.subr.bf16.mxu0 %v2964_v3  ;;  %2669 = vmatpush3.bf16.msra.mxu1 %v2963_v2  ;;  %v3016_v2 = vld [vmem:[%s3825_s3 + $0x2c0] sm:$0xff]   ;;  %v529_v3 = vcombine.high %v3501_v61, %v3501_v61 }
  0x30   :  { %2670 = vmatprep.subr.bf16.mxu1 %v2965_v4  ;;  %v3017_v4 = vld [vmem:[%s3825_s3 + $0x280] sm:$0xff]  }
  0x32   :  { %2689 = vmatpush3.bf16.msra.mxu0 %v2966_v5  ;;  %v3018_v5 = vld [vmem:[%s3825_s3 + $0x370] sm:$0xff]  }
  0x33   :  { %2690 = vmatprep.subr.bf16.mxu0 %v2968_v7  ;;  %2671 = vmatpush3.bf16.msra.mxu1 %v2967_v6  ;;  %v560_v6 = vcombine.high %v550_v1, %v550_v1  ;;  %v557_v7 = vrot.slane %v529_v3, %v3270_v34  ;;  %v3073_v3 = vld [vmem:[%s3825_s3 + $0x4d0] sm:$0xff]  }
  0x34   :  { %2672 = vmatprep.subr.bf16.mxu1 %v2969_v8  ;;  %v3019_v8 = vld [vmem:[%s3825_s3 + $0x330] sm:$0xff]  }
  0x36   :  { %2691 = vmatpush3.bf16.msra.mxu0 %v2970_v9  ;;  %v558_v9 = vcombine.high %v536_v62, %v536_v62 }
  0x37   :  { %2692 = vmatprep.subr.bf16.mxu0 %v2972_v11  ;;  %2673 = vmatpush3.bf16.msra.mxu1 %v2971_v10  ;;  %v3020_v10 = vld [vmem:[%s3825_s3 + $0x3f8] sm:$0xff]   ;;  %v3021_v11 = vld [vmem:[%s3825_s3 + $0x368] sm:$0xff]  }
  0x38   :  { %2674 = vmatprep.subr.bf16.mxu1 %v2973_v12  ;;  %v561_v12 = vcombine.high %v557_v7, %v557_v7 }
  0x3a   :  { %2693 = vmatpush3.bf16.msra.mxu0 %v2974_v13  ;;  %v3022_v13 = vld [vmem:[%s3825_s3 + $0x3b8] sm:$0xff]  }
  0x3b   :  { %2694 = vmatprep.subr.bf16.mxu0 %v2976_v15  ;;  %2675 = vmatpush3.bf16.msra.mxu1 %v2975_v14  ;;  %v3023_v14 = vld [vmem:[%s3825_s3 + $0x328] sm:$0xff]   ;;  %v3024_v15 = vld [vmem:[%s3825_s3 + $0x3f0] sm:$0xff]  }
  0x3c   :  { %2676 = vmatprep.subr.bf16.mxu1 %v2977_v16  ;;  %v3025_v16 = vld [vmem:[%s3825_s3 + $0x360] sm:$0xff]  }
  0x3e   :  { %2695 = vmatpush3.bf16.msra.mxu0 %v2978_v17  ;;  %v3026_v17 = vld [vmem:[%s3825_s3 + $0x3b0] sm:$0xff]  }
  0x3f   :  { %2696 = vmatprep.subr.bf16.mxu0 %v2980_v19  ;;  %2677 = vmatpush3.bf16.msra.mxu1 %v2979_v18  ;;  %v3027_v18 = vld [vmem:[%s3825_s3 + $0x320] sm:$0xff]   ;;  %v3028_v19 = vld [vmem:[%s3825_s3 + $0x3e8] sm:$0xff]  }
  0x40   :  { %2706 = vmatprep.subr.bf16.mxu1 %v2982_v21  ;;  %v3030_v21 = vld [vmem:[%s3825_s3 + $0x3a8] sm:$0xff]  }
  0x42   :  { %2697 = vmatpush3.bf16.msra.mxu0 %v2981_v20  ;;  %1800 = vmatmul.mubr.bf16.vlgmr.msra.gmra.mxu1 %v494_v22  ;;  %v3029_v20 = vld [vmem:[%s3825_s3 + $0x358] sm:$0xff]  }
  0x43   :  { %2698 = vmatprep.subr.bf16.mxu0 %v2984_v24  ;;  %2707 = vmatpush3.bf16.msra.mxu1 %v2983_v23  ;;  %v3031_v22 = vld [vmem:[%s3825_s3 + $0x318] sm:$0xff]   ;;  %v3032_v23 = vld [vmem:[%s3825_s3 + $0x3e0] sm:$0xff]   ;;  %v3033_v24 = vld [vmem:[%s3825_s3 + $0x350] sm:$0xff]  }
  0x44   :  { %2708 = vmatprep.subr.bf16.mxu1 %v2986_v26  ;;  %1879 = vmatprep.mubr.bf16.mxu1 %v550_v1  ;;  %v3035_v26 = vld [vmem:[%s3825_s3 + $0x310] sm:$0xff]   ;;  %v3071_v1 = vld [vmem:[%s3825_s3 + $0x498] sm:$0xff]  }
  0x46   :  { %2699 = vmatpush3.bf16.msra.mxu0 %v2985_v25  ;;  %v3034_v25 = vld [vmem:[%s3825_s3 + $0x3a0] sm:$0xff]  }
  0x47   :  { %2728 = vmatprep.subr.bf16.mxu0 %v2988_v29  ;;  %2709 = vmatpush3.bf16.msra.mxu1 %v2987_v27  ;;  %v3036_v27 = vld [vmem:[%s3825_s3 + $0x3d8] sm:$0xff]  }
  0x48   :  { %2710 = vmatprep.subr.bf16.mxu1 %v2989_v30  ;;  %v3038_v29 = vld [vmem:[%s3825_s3 + $0x398] sm:$0xff]   ;;  %v3039_v30 = vld [vmem:[%s3825_s3 + $0x308] sm:$0xff]  }
  0x49   :  { %1840 = vmatmul.mubr.bf16.vlgmr.msra.gmra.mxu0 %v510_v28  ;;  %v3037_v28 = vld [vmem:[%s3825_s3 + $0x348] sm:$0xff]  }
  0x4a   :  { %2729 = vmatpush3.bf16.msra.mxu0 %v2990_v31  ;;  %1919 = vmatprep.mubr.bf16.mxu0 %v560_v6  ;;  %v3040_v31 = vld [vmem:[%s3825_s3 + $0x3d0] sm:$0xff]   ;;  %v3076_v6 = vld [vmem:[%s3825_s3 + $0x400] sm:$0xff]  }
  0x4b   :  { %2730 = vmatprep.subr.bf16.mxu0 %v2992_v33  ;;  %2711 = vmatpush3.bf16.msra.mxu1 %v2991_v32  ;;  %v3041_v32 = vld [vmem:[%s3825_s3 + $0x340] sm:$0xff]   ;;  %v3042_v33 = vld [vmem:[%s3825_s3 + $0x390] sm:$0xff]  }
  0x4c   :  { %2712 = vmatprep.subr.bf16.mxu1 %v2993_v35  ;;  %v3043_v35 = vld [vmem:[%s3825_s3 + $0x300] sm:$0xff]  }
  0x4e   :  { %2731 = vmatpush3.bf16.msra.mxu0 %v2994_v36  ;;  %v3045_v36 = vld [vmem:[%s3825_s3 + $0x3c8] sm:$0xff]  }
  0x4f   :  { %2732 = vmatprep.subr.bf16.mxu0 %v2996_v38  ;;  %2713 = vmatpush3.bf16.msra.mxu1 %v2995_v37  ;;  %v3046_v37 = vld [vmem:[%s3825_s3 + $0x388] sm:$0xff]   ;;  %v3047_v38 = vld [vmem:[%s3825_s3 + $0x478] sm:$0xff]  }
  0x50   :  { %2714 = vmatprep.subr.bf16.mxu1 %v2997_v39  ;;  %v543_v39 = vrot.slane %v3501_v61, %v3270_v34  ;;  %v3068_v61 = vld [vmem:[%s3825_s3 + $0x410] sm:$0xff]  }
  0x52   :  { %2733 = vmatpush3.bf16.msra.mxu0 %v2998_v40  ;;  %v3048_v40 = vld [vmem:[%s3825_s3 + $0x438] sm:$0xff]  }
  0x53   :  { %2734 = vmatprep.subr.bf16.mxu0 %v3000_v42  ;;  %2715 = vmatpush3.bf16.msra.mxu1 %v2999_v41  ;;  %v3049_v41 = vld [vmem:[%s3825_s3 + $0x3c0] sm:$0xff]  }
  0x54   :  { %2716 = vmatprep.subr.bf16.mxu1 %v3001_v43  ;;  %v3050_v42 = vld [vmem:[%s3825_s3 + $0x380] sm:$0xff]   ;;  %v3051_v43 = vld [vmem:[%s3825_s3 + $0x470] sm:$0xff]  }
  0x56   :  { %2735 = vmatpush3.bf16.msra.mxu0 %v3002_v44  ;;  %v3052_v44 = vld [vmem:[%s3825_s3 + $0x430] sm:$0xff]  }
  0x57   :  { %2736 = vmatprep.subr.bf16.mxu0 %v3004_v46  ;;  %2717 = vmatpush3.bf16.msra.mxu1 %v3003_v45  ;;  %v559_v45 = vcombine.high %v543_v39, %v543_v39  ;;  %v3053_v46 = vld [vmem:[%s3825_s3 + $0x4f8] sm:$0xff]  }
  0x58   :  { %2718 = vmatprep.subr.bf16.mxu1 %v3005_v47  ;;  %v3054_v47 = vld [vmem:[%s3825_s3 + $0x468] sm:$0xff]  }
  0x5a   :  { %2737 = vmatpush3.bf16.msra.mxu0 %v3006_v48  ;;  %v3055_v48 = vld [vmem:[%s3825_s3 + $0x4b8] sm:$0xff]  }
  0x5b   :  { %2738 = vmatprep.subr.bf16.mxu0 %v3008_v50  ;;  %2719 = vmatpush3.bf16.msra.mxu1 %v3007_v49  ;;  %v3056_v49 = vld [vmem:[%s3825_s3 + $0x428] sm:$0xff]   ;;  %v3057_v50 = vld [vmem:[%s3825_s3 + $0x4f0] sm:$0xff]  }
  0x5c   :  { %2720 = vmatprep.subr.bf16.mxu1 %v3009_v51  ;;  %v3058_v51 = vld [vmem:[%s3825_s3 + $0x460] sm:$0xff]  }
  0x5e   :  { %2739 = vmatpush3.bf16.msra.mxu0 %v3010_v52  ;;  %v3059_v52 = vld [vmem:[%s3825_s3 + $0x4b0] sm:$0xff]  }
  0x5f   :  { %2740 = vmatprep.subr.bf16.mxu0 %v3012_v56  ;;  %2721 = vmatpush3.bf16.msra.mxu1 %v3011_v53  ;;  %v3060_v53 = vld [vmem:[%s3825_s3 + $0x420] sm:$0xff]   ;;  %v3063_v56 = vld [vmem:[%s3825_s3 + $0x4a8] sm:$0xff]  }
  0x60   :  { %2750 = vmatprep.subr.bf16.mxu1 %v3014_v60  ;;  %v3067_v60 = vld [vmem:[%s3825_s3 + $0x4a0] sm:$0xff]  }
  0x62   :  { %2741 = vmatpush3.bf16.msra.mxu0 %v3013_v58  ;;  %1880 = vmatmul.mubr.bf16.vlgmr.msra.gmra.mxu1 %v536_v62  ;;  %v3065_v58 = vld [vmem:[%s3825_s3 + $0x4e0] sm:$0xff]   ;;  %v3069_v62 = vld [vmem:[%s3825_s3 + $0x4d8] sm:$0xff]  }
  0x63   :  { %2742 = vmatprep.subr.bf16.mxu0 %v3016_v2  ;;  %2751 = vmatpush3.bf16.msra.mxu1 %v3015_v63  ;;  %v3070_v63 = vld [vmem:[%s3825_s3 + $0x448] sm:$0xff]  }
  0x64   :  { %2752 = vmatprep.subr.bf16.mxu1 %v3018_v5  ;;  %1959 = vmatprep.mubr.bf16.mxu1 %v557_v7  ;;  %v3072_v2 = vld [vmem:[%s3825_s3 + $0x408] sm:$0xff]   ;;  %v3075_v5 = vld [vmem:[%s3825_s3 + $0x490] sm:$0xff]  }
  0x65   :  { %v47_v7 = vld [vmem:[%s3827_s1 + $0x10] sm:$0x3f]  ;;  %s3109_s1 = smov 96  }
  0x66   :  { %2743 = vmatpush3.bf16.msra.mxu0 %v3017_v4  ;;  %v3074_v4 = vld [vmem:[%s3825_s3 + $0x440] sm:$0xff]  }
  0x67   :  { %2772 = vmatprep.subr.bf16.mxu0 %v3020_v10  ;;  %2753 = vmatpush3.bf16.msra.mxu1 %v3019_v8  ;;  %v569_v8 = vrot.slane %v47_v7, %v3270_v34  ;;  %v562_v10 = vcombine.high %v47_v7, %v47_v7 }
  0x68   :  { %2754 = vmatprep.subr.bf16.mxu1 %v3021_v11  ;;  %v3078_v11 = vld [vmem:[%s3825_s3 + $0x488] sm:$0xff]  }
  0x69   :  { %1920 = vmatmul.mubr.bf16.vlgmr.msra.gmra.mxu0 %v558_v9  ;;  %v3077_v9 = vld [vmem:[%s3825_s3 + $0x4c8] sm:$0xff]  }
  0x6a   :  { %2773 = vmatpush3.bf16.msra.mxu0 %v3022_v13  ;;  %1999 = vmatprep.mubr.bf16.mxu0 %v561_v12  ;;  %v577_v12 = vcombine.high %v569_v8, %v569_v8  ;;  %v3079_v13 = vld [vmem:[%s3825_s3 + $0x578] sm:$0xff]  }
  0x6b   :  { %2774 = vmatprep.subr.bf16.mxu0 %v3024_v15  ;;  %2755 = vmatpush3.bf16.msra.mxu1 %v3023_v14  ;;  %v576_v14 = vrot.slane %v562_v10, %v3270_v34  ;;  %v585_v15 = vrot.slane %v569_v8, %v3270_v34 }
  0x6c   :  { %2756 = vmatprep.subr.bf16.mxu1 %v3025_v16  ;;  %v3080_v16 = vld [vmem:[%s3825_s3 + $0x538] sm:$0xff]  }
  0x6e   :  { %2775 = vmatpush3.bf16.msra.mxu0 %v3026_v17  ;;  %v599_v17 = vrot.slane %v577_v12, %v3270_v34 }
  0x6f   :  { %2776 = vmatprep.subr.bf16.mxu0 %v3028_v19  ;;  %2757 = vmatpush3.bf16.msra.mxu1 %v3027_v18  ;;  %v3081_v18 = vld [vmem:[%s3825_s3 + $0x4c0] sm:$0xff]   ;;  %v578_v19 = vcombine.high %v576_v14, %v576_v14 }
  0x70   :  { %2758 = vmatprep.subr.bf16.mxu1 %v3029_v20  ;;  %v3082_v20 = vld [vmem:[%s3825_s3 + $0x480] sm:$0xff]  }
  0x72   :  { %2777 = vmatpush3.bf16.msra.mxu0 %v3030_v21  ;;  %v3083_v21 = vld [vmem:[%s3825_s3 + $0x570] sm:$0xff]  }
  0x73   :  { %2778 = vmatprep.subr.bf16.mxu0 %v3032_v23  ;;  %2759 = vmatpush3.bf16.msra.mxu1 %v3031_v22  ;;  %v608_v22 = vcombine.high %v599_v17, %v599_v17  ;;  %v607_v23 = vcombine.high %v585_v15, %v585_v15 }
  0x74   :  { %2760 = vmatprep.subr.bf16.mxu1 %v3033_v24  ;;  %v606_v24 = vrot.slane %v578_v19, %v3270_v34 }
  0x76   :  { %2779 = vmatpush3.bf16.msra.mxu0 %v3034_v25  ;;  %v3084_v25 = vld [vmem:[%s3825_s3 + $0x530] sm:$0xff]  }
  0x77   :  { %2780 = vmatprep.subr.bf16.mxu0 %v3036_v27  ;;  %2761 = vmatpush3.bf16.msra.mxu1 %v3035_v26  ;;  %v3085_v26 = vld [vmem:[%s3825_s3 + $0x568] sm:$0xff]  }
  0x78   :  { %2762 = vmatprep.subr.bf16.mxu1 %v3037_v28  ;;  %v3086_v27 = vld [vmem:[%s3825_s3 + $0x528] sm:$0xff]   ;;  %v3087_v28 = vld [vmem:[%s3825_s3 + $0x560] sm:$0xff]  }
  0x7a   :  { %2781 = vmatpush3.bf16.msra.mxu0 %v3038_v29  ;;  %v3088_v29 = vld [vmem:[%s3825_s3 + $0x520] sm:$0xff]  }
  0x7b   :  { %2782 = vmatprep.subr.bf16.mxu0 %v3040_v31  ;;  %2763 = vmatpush3.bf16.msra.mxu1 %v3039_v30  ;;  %v3089_v30 = vld [vmem:[%s3825_s3 + $0x558] sm:$0xff]  }
  0x7c   :  { %2764 = vmatprep.subr.bf16.mxu1 %v3041_v32  ;;  %v3090_v31 = vld [vmem:[%s3825_s3 + $0x518] sm:$0xff]   ;;  %v3091_v32 = vld [vmem:[%s3825_s3 + $0x550] sm:$0xff]  }
  0x7e   :  { %2783 = vmatpush3.bf16.msra.mxu0 %v3042_v33  ;;  %v3092_v33 = vld [vmem:[%s3825_s3 + $0x510] sm:$0xff]  }
  0x7f   :  { %2784 = vmatprep.subr.bf16.mxu0 %v3045_v36  ;;  %2765 = vmatpush3.bf16.msra.mxu1 %v3043_v35  ;;  %v3093_v35 = vld [vmem:[%s3825_s3 + $0x548] sm:$0xff]  }
  0x80   :  { %2794 = vmatprep.subr.bf16.mxu1 %v3047_v38  ;;  %v3094_v36 = vld [vmem:[%s3825_s3 + $0x508] sm:$0xff]   ;;  %v3096_v38 = vld [vmem:[%s3825_s3 + $0x500] sm:$0xff]  }
  0x82   :  { %2785 = vmatpush3.bf16.msra.mxu0 %v3046_v37  ;;  %1960 = vmatmul.mubr.bf16.vlgmr.msra.gmra.mxu1 %v543_v39  ;;  %v3095_v37 = vld [vmem:[%s3825_s3 + $0x540] sm:$0xff]   ;;  %v592_v39 = vrot.slane %v576_v14, %v3270_v34 }
  0x83   :  { %2786 = vmatprep.subr.bf16.mxu0 %v3049_v41  ;;  %2795 = vmatpush3.bf16.msra.mxu1 %v3048_v40 }
  0x84   :  { %2796 = vmatprep.subr.bf16.mxu1 %v3051_v43  ;;  %2039 = vmatprep.mubr.bf16.mxu1 %v599_v17 }
  0x86   :  { %2787 = vmatpush3.bf16.msra.mxu0 %v3050_v42 }
  0x87   :  { %2816 = vmatprep.subr.bf16.mxu0 %v3053_v46  ;;  %2797 = vmatpush3.bf16.msra.mxu1 %v3052_v44 }
  0x88   :  { %2798 = vmatprep.subr.bf16.mxu1 %v3054_v47 }
  0x89   :  { %2000 = vmatmul.mubr.bf16.vlgmr.msra.gmra.mxu0 %v559_v45 }
  0x8a   :  { %2817 = vmatpush3.bf16.msra.mxu0 %v3055_v48  ;;  %2079 = vmatprep.mubr.bf16.mxu0 %v608_v22 }
  0x8b   :  { %2818 = vmatprep.subr.bf16.mxu0 %v3057_v50  ;;  %2799 = vmatpush3.bf16.msra.mxu1 %v3056_v49 }
  0x8c   :  { %2800 = vmatprep.subr.bf16.mxu1 %v3058_v51 }
  0x8e   :  { %2819 = vmatpush3.bf16.msra.mxu0 %v3059_v52 }
  0x8f   :  { %2820 = vmatprep.subr.bf16.mxu0 %v3061_v54  ;;  %2801 = vmatpush3.bf16.msra.mxu1 %v3060_v53 }
  0x90   :  { %2802 = vmatprep.subr.bf16.mxu1 %v3062_v55 }
  0x92   :  { %2821 = vmatpush3.bf16.msra.mxu0 %v3063_v56 }
  0x93   :  { %2822 = vmatprep.subr.bf16.mxu0 %v3065_v58  ;;  %2803 = vmatpush3.bf16.msra.mxu1 %v3064_v57 }
  0x94   :  { %2804 = vmatprep.subr.bf16.mxu1 %v3066_v59 }
  0x96   :  { %2823 = vmatpush3.bf16.msra.mxu0 %v3067_v60 }
  0x97   :  { %2824 = vmatprep.subr.bf16.mxu0 %v3069_v62  ;;  %2805 = vmatpush3.bf16.msra.mxu1 %v3068_v61  ;;  %v3098_v61 = vld [vmem:[%s3828_s5 + $0x8] sm:$0xff]  }
  0x98   :  { %2806 = vmatprep.subr.bf16.mxu1 %v3070_v63 }
  0x9a   :  { %2825 = vmatpush3.bf16.msra.mxu0 %v3071_v1 }
  0x9b   :  { %2826 = vmatprep.subr.bf16.mxu0 %v3073_v3  ;;  %2807 = vmatpush3.bf16.msra.mxu1 %v3072_v2  ;;  %v3099_v2 = vld [vmem:[%s3828_s5] sm:$0xff]  }
  0x9c   :  { %2808 = vmatprep.subr.bf16.mxu1 %v3074_v4 }
  0x9e   :  { %2827 = vmatpush3.bf16.msra.mxu0 %v3075_v5 }
  0x9f   :  { %2828 = vmatprep.subr.bf16.mxu0 %v3077_v9  ;;  %2809 = vmatpush3.bf16.msra.mxu1 %v3076_v6 }
  0xa0   :  { %2838 = vmatprep.subr.bf16.mxu1 %v3079_v13 }
  0xa2   :  { %2829 = vmatpush3.bf16.msra.mxu0 %v3078_v11  ;;  %2040 = vmatmul.mubr.bf16.vlgmr.msra.gmra.mxu1 %v585_v15 }
  0xa3   :  { %2830 = vmatprep.subr.bf16.mxu0 %v3081_v18  ;;  %2839 = vmatpush3.bf16.msra.mxu1 %v3080_v16 }
  0xa4   :  { %2840 = vmatprep.subr.bf16.mxu1 %v3083_v21  ;;  %2119 = vmatprep.mubr.bf16.mxu1 %v606_v24 }
  0xa6   :  { %2831 = vmatpush3.bf16.msra.mxu0 %v3082_v20 }
  0xa7   :  { %2880 = vmatprep.subr.bf16.mxu0 %v3106_v0  ;;  %2841 = vmatpush3.bf16.msra.mxu1 %v3084_v25 }
  0xa8   :  { %2842 = vmatprep.subr.bf16.mxu1 %v3085_v26 }
  0xa9   :  { %2080 = vmatmul.mubr.bf16.vlgmr.msra.gmra.mxu0 %v607_v23 }
  0xaa   :  { %2884 = vmatprep.mubr.msk.bf16.mxu0 %vm3107_vm0, %v3106_v0  ;;  %2881 = vmatpush3.bf16.msra.mxu0 %v3098_v61 }
  0xab   :  { %2843 = vmatpush3.bf16.msra.mxu1 %v3086_v27  ;;  %2882 = vmatprep.subr.bf16.mxu0 %v3106_v0 }
  0xac   :  { %2844 = vmatprep.subr.bf16.mxu1 %v3087_v28 }
  0xae   :  { %2883 = vmatpush3.bf16.msra.mxu0 %v3099_v2 }
  0xaf   :  { %2845 = vmatpush3.bf16.msra.mxu1 %v3088_v29  ;;  %2888 = vmatprep.subr.bf16.mxu0 %v3106_v0 }
  0xb0   :  { %2846 = vmatprep.subr.bf16.mxu1 %v3089_v30 }
  0xb3   :  { %2847 = vmatpush3.bf16.msra.mxu1 %v3090_v31 }
  0xb4   :  { %2848 = vmatprep.subr.bf16.mxu1 %v3091_v32 }
  0xb7   :  { %2849 = vmatpush3.bf16.msra.mxu1 %v3092_v33 }
  0xb8   :  { %2850 = vmatprep.subr.bf16.mxu1 %v3093_v35 }
  0xbb   :  { %2851 = vmatpush3.bf16.msra.mxu1 %v3094_v36 }
  0xbc   :  { %2852 = vmatprep.subr.bf16.mxu1 %v3095_v37 }
  0xbf   :  { %2853 = vmatpush3.bf16.msra.mxu1 %v3096_v38 }
  0xc2   :  { %2120 = vmatmul.mubr.bf16.vlgmr.msra.gmra.mxu1 %v592_v39 }
  0xc9   :  { %v455_v40 = vpop.f32.mrf.mxu0 }
  0xcb   :  { %v2878_v41 = vpop.f32.mrf.mxu0 }
  0xcd   :  { %v458_v42 = vpop.f32.mrf.mxu0 }
  0xcf   :  { %v2879_v43 = vpop.f32.mrf.mxu0 }
  0xe2   :  { %v2634_v44 = vpop.f32.mrf.mxu1 }
  0xe4   :  { %v2635_v45 = vpop.f32.mrf.mxu1 }
  0xe5   :  { %v2636_v46 = vadd.f32 %v2635_v45, %v2634_v44 }
  0xe6   :  { %v2637_v47 = vpop.f32.mrf.mxu1 }
  0xe7   :  { %v1722_v49 = vadd.f32 %v2636_v46, %v455_v40  ;;  %v2598_v47 = vld [vmem:[%s3830_s4] ss:$0 sm:$0xff] }
  0xe8   :  { %v2638_v50 = vpop.f32.mrf.mxu1 }
  0xe9   :  { %v2656_v48 = vpop.f32.mrf.mxu0 }
  0xeb   :  { %v2657_v51 = vpop.f32.mrf.mxu0 }
  0xec   :  { %v2658_v52 = vadd.f32 %v2657_v51, %v2656_v48 }
  0xed   :  { %v2659_v53 = vpop.f32.mrf.mxu0 }
  0xee   :  { %v1762_v54 = vadd.f32 %v2658_v52, %v1722_v49  ;;  %v3100_v52 = vld [vmem:[%s3829_s7 + $0x8] sm:$0xff]  }
  0xef   :  { %v2660_v55 = vpop.f32.mrf.mxu0 }
  0xf0   :  { %v3102_v55 = vld [vmem:[%s3831_s9 + $0x8] sm:$0xff]  }
 0x102   :  { %v2678_v56 = vpop.f32.mrf.mxu1 }
 0x104   :  { %v2679_v34 = vpop.f32.mrf.mxu1 }
 0x105   :  { %v2680_v57 = vadd.f32 %v2679_v34, %v2678_v56  ;;  %v3103_v34 = vld [vmem:[%s3831_s9] sm:$0xff]  }
 0x106   :  { %v2681_v58 = vpop.f32.mrf.mxu1 }
 0x107   :  { %v1802_v60 = vadd.f32 %v2680_v57, %v1762_v54  ;;  %v3101_v54 = vld [vmem:[%s3829_s7] sm:$0xff]  }
 0x108   :  { %v2682_v62 = vpop.f32.mrf.mxu1  ;;  %v2599_v57 = vld [vmem:[%s3833_s6] ss:$0 sm:$0xff] }
 0x109   :  { %v2700_v59 = vpop.f32.mrf.mxu0 }
 0x10b   :  { %v2701_v63 = vpop.f32.mrf.mxu0 }
 0x10c   :  { %v2702_v1 = vadd.f32 %v2701_v63, %v2700_v59  ;;  %v3104_v63 = vld [vmem:[%s3832_s11 + $0x8] sm:$0xff]  }
 0x10d   :  { %v2703_v3 = vpop.f32.mrf.mxu0 }
 0x10e   :  { %v1842_v4 = vadd.f32 %v2702_v1, %v1802_v60  ;;  %v3105_v3 = vld [vmem:[%s3832_s11] sm:$0xff]  }
 0x10f   :  { %v2704_v5 = vpop.f32.mrf.mxu0 }
 0x122   :  { %v2722_v6 = vpop.f32.mrf.mxu1 }
 0x124   :  { %v2723_v7 = vpop.f32.mrf.mxu1 }
 0x125   :  { %v2724_v8 = vadd.f32 %v2723_v7, %v2722_v6 }
 0x126   :  { %v2725_v9 = vpop.f32.mrf.mxu1 }
 0x127   :  { %v1882_v11 = vadd.f32 %v2724_v8, %v1842_v4  ;;  %v2603_v4 = vld [vmem:[%s3834_s8] ss:$0 sm:$0xff]  ;;  %s3110_s8 = smov 64  }
 0x128   :  { %v2726_v12 = vpop.f32.mrf.mxu1 }
 0x129   :  { %v2744_v10 = vpop.f32.mrf.mxu0 }
 0x12b   :  { %v2745_v13 = vpop.f32.mrf.mxu0 }
 0x12c   :  { %v2746_v14 = vadd.f32 %v2745_v13, %v2744_v10 }
 0x12d   :  { %v2747_v15 = vpop.f32.mrf.mxu0 }
 0x12e   :  { %v1922_v16 = vadd.f32 %v2746_v14, %v1882_v11 }
 0x12f   :  { %v2748_v17 = vpop.f32.mrf.mxu0 }
 0x142   :  { %v2766_v18 = vpop.f32.mrf.mxu1 }
 0x144   :  { %v2767_v19 = vpop.f32.mrf.mxu1 }
 0x145   :  { %v2768_v35 = vadd.f32 %v2767_v19, %v2766_v18 }
 0x146   :  { %v2769_v20 = vpop.f32.mrf.mxu1 }
 0x147   :  { %v1962_v37 = vadd.f32 %v2768_v35, %v1922_v16 }
 0x148   :  { %v2770_v22 = vpop.f32.mrf.mxu1 }
 0x149   :  { %v2788_v21 = vpop.f32.mrf.mxu0 }
 0x14b   :  { %v2789_v23 = vpop.f32.mrf.mxu0 }
 0x14c   :  { %v2790_v36 = vadd.f32 %v2789_v23, %v2788_v21  ;;  %v2607_v21 = vld [vmem:[%s3836_s10] ss:$0 sm:$0xff] }
 0x14d   :  { %v2791_v24 = vpop.f32.mrf.mxu0 }
 0x14e   :  { %v2002_v39 = vadd.f32 %v2790_v36, %v1962_v37 }
 0x14f   :  { %v2792_v25 = vpop.f32.mrf.mxu0 }
 0x162   :  { %v2810_v26 = vpop.f32.mrf.mxu1 }
 0x164   :  { %v2811_v27 = vpop.f32.mrf.mxu1 }
 0x165   :  { %v2812_v38 = vadd.f32 %v2811_v27, %v2810_v26 }
 0x166   :  { %v2813_v29 = vpop.f32.mrf.mxu1 }
 0x167   :  { %v2042_v42 = vadd.f32 %v2812_v38, %v2002_v39 }
 0x168   :  { %v2814_v31 = vpop.f32.mrf.mxu1 }
 0x169   :  { %v2832_v28 = vpop.f32.mrf.mxu0 }
 0x16b   :  { %v2833_v30 = vpop.f32.mrf.mxu0 }
 0x16c   :  { %v2834_v40 = vadd.f32 %v2833_v30, %v2832_v28 }
 0x16d   :  { %v2835_v32 = vpop.f32.mrf.mxu0 }
 0x16e   :  { %v2082_v44 = vadd.f32 %v2834_v40, %v2042_v42 }
 0x16f   :  { %v2836_v33 = vpop.f32.mrf.mxu0 }
 0x182   :  { %v2854_v41 = vpop.f32.mrf.mxu1 }
 0x184   :  { %v2855_v43 = vpop.f32.mrf.mxu1 }
 0x185   :  { %v2856_v45 = vadd.f32 %v2855_v43, %v2854_v41 }
 0x186   :  { %v2857_v46 = vpop.f32.mrf.mxu1 }
 0x187   :  { %v2122_v48 = vadd.f32 %v2856_v45, %v2082_v44 }
 0x188   :  { %v2858_v49 = vpop.f32.mrf.mxu1 }
 0x189   :  { %v2134_v50 = vadd.f32 %v2598_v47, %v2122_v48 }
 0x18b   :  { %v2135_v51 = vmax.f32 %v2134_v50, 0.0 }
 0x18d   :  { %v2136_v53 = vpack.c.bf16 %v2135_v51, %v2135_v51 }
 0x18f   :  { %2215 = vrot.lane.b32.xlu0 %v2136_v53, %s3109_s1  ;;  %2885 = vmatmul.mubr.msk.bf16.vlgmr.msra.gmra.mxu0 %vm417_vm1, %v2136_v53 }
 0x190   :  { %2889 = vmatpush3.bf16.msra.mxu0 %v3100_v52  ;;  %2892 = vmatprep.mubr.msk.bf16.mxu0 %vm3107_vm0, %v3106_v0 }
 0x191   :  { %2890 = vmatprep.subr.bf16.mxu0 %v3106_v0 }
 0x194   :  { %2891 = vmatpush3.bf16.msra.mxu0 %v3101_v54 }
 0x195   :  { %2896 = vmatprep.subr.bf16.mxu0 %v3106_v0 }
 0x201   :  { %v2216_v56 = vpop.permute.xlu0 %2215 }
 0x202   :  { %2893 = vmatmul.mubr.msk.bf16.vlgmr.msra.gmra.mxu0 %vm417_vm1, %v2216_v56 }
 0x203   :  { %2897 = vmatpush3.bf16.msra.mxu0 %v3102_v55  ;;  %2900 = vmatprep.mubr.msk.bf16.mxu0 %vm3107_vm0, %v3106_v0 }
 0x204   :  { %2898 = vmatprep.subr.bf16.mxu0 %v3106_v0 }
 0x207   :  { %2899 = vmatpush3.bf16.msra.mxu0 %v3103_v34 }
 0x208   :  { %2904 = vmatprep.subr.bf16.mxu0 %v3106_v0 }
 0x24f   :  { %v2197_v58 = vpop.f32.mrf.mxu0 }
 0x250   :  { %v2198_v59 = vadd.f32 %v2599_v57, %v2197_v58 }
 0x251   :  { %v2886_v60 = vpop.f32.mrf.mxu0 }
 0x252   :  { %v2272_v61 = vmax.f32 %v2198_v59, 0.0 }
 0x253   :  { %v2200_v62 = vpop.f32.mrf.mxu0 }
 0x254   :  { %v2273_v1 = vpack.c.bf16 %v2272_v61, %v2272_v61 }
 0x255   :  { %v2887_v2 = vpop.f32.mrf.mxu0 }
 0x256   :  { %2901 = vmatmul.mubr.msk.bf16.vlgmr.msra.gmra.mxu0 %vm417_vm1, %v2273_v1 }
 0x257   :  { %2905 = vmatpush3.bf16.msra.mxu0 %v3104_v63  ;;  %2908 = vmatprep.mubr.msk.bf16.mxu0 %vm3107_vm0, %v3106_v0 }
 0x258   :  { %2906 = vmatprep.subr.bf16.mxu0 %v3106_v0  ;;  %v2611_v0 = vld [vmem:[%s3835_s12] ss:$0 sm:$0xff] }
 0x25b   :  { %2907 = vmatpush3.bf16.msra.mxu0 %v3105_v3 }
 0x2c2   :  { %v2266_v5 = vpop.f32.mrf.mxu0 }
 0x2c3   :  { %v2267_v6 = vadd.f32 %v2603_v4, %v2266_v5 }
 0x2c4   :  { %v2894_v7 = vpop.f32.mrf.mxu0 }
 0x2c5   :  { %v2274_v8 = vmax.f32 %v2267_v6, 0.0 }
 0x2c6   :  { %v2269_v9 = vpop.f32.mrf.mxu0 }
 0x2c7   :  { %v2275_v10 = vpack.c.bf16 %v2274_v8, %v2274_v8 }
 0x2c8   :  { %v2895_v11 = vpop.f32.mrf.mxu0 }
 0x2c9   :  { %2909 = vmatmul.mubr.msk.bf16.vlgmr.msra.gmra.mxu0 %vm417_vm1, %v2275_v10 }
 0x316   :  { %v2336_v12 = vpop.f32.mrf.mxu0 }
 0x317   :  { %v2337_v22 = vadd.f32 %v2607_v21, %v2336_v12 }
 0x318   :  { %v2902_v13 = vpop.f32.mrf.mxu0 }
 0x31a   :  { %v2339_v14 = vpop.f32.mrf.mxu0 }
 0x31c   :  { %v2903_v15 = vpop.f32.mrf.mxu0 }
 0x389   :  { %v2402_v16 = vpop.f32.mrf.mxu0 }
 0x38a   :  { %v2403_v17 = vadd.f32 %v2611_v0, %v2402_v16 }
 0x38b   :  { %v2910_v18 = vpop.f32.mrf.mxu0 }
 0x38c   :  { %2409 = vrot.lane.b32.xlu0 %v2403_v17, %s3110_s8 }
 0x38d   :  { %v2405_v19 = vpop.f32.mrf.mxu0 }
 0x38f   :  { %v2911_v20 = vpop.f32.mrf.mxu0 }
 0x3fe   :  { %v2410_v23 = vpop.permute.xlu0 %2409 }
 0x3ff   :  { %v2413_v24 = vsel %vm2412_vm2, %v2337_v22, %v2410_v23 }
 0x400   :  { %2414 = vst [vmem:[%s3837_s13] sm:$0x3] %v2413_v24 }

</bundles_post_ra>
